<compile_context>
chip_gen: v7x
topology: tpu7x:2x2x1
jax: 0.10.0
libtpu: 0.0.40
codegen_flags: <defaults>
</compile_context>

<pallas_src>
import jax
import jax.numpy as jnp
from jax.experimental import pallas as pl
from jax.experimental.pallas import tpu as pltpu


def _lf_softsign_kernel(x_ref, o_ref):
    # Compute in f32, cast on store; exact divide is free under the HBM stream.
    x = x_ref[...].astype(jnp.float32)
    o_ref[...] = (x / (0.01 + jnp.abs(x))).astype(o_ref.dtype)


def _tuning_for_device():
    """Returns (target_block_bytes, vmem_limit_bytes_or_None, num_tensorcores)."""
    try:
        kind = jax.devices()[0].device_kind.lower()
    except Exception:
        kind = ""
    if "v7" in kind:
        # 3.2 TB/s per TC: bigger blocks to amortize ~0.35 us/step; 2 TCs.
        return 6 * 1024 * 1024, 48 << 20, 2
    if "v6" in kind:
        # ~1.4 TB/s, 32 MiB scoped default: 4 MiB blocks (16 MiB live) fit fine.
        return 4 * 1024 * 1024, None, 1
    # v5e / unknown: 16 MiB scoped VMEM default -> keep 2 MiB blocks (8 MiB live).
    return 2 * 1024 * 1024, None, 1


def lf_softsign(x: jax.Array) -> jax.Array:
    """Elementwise LFSoftSign. Accepts any shape; flattens to a lane-dense slab."""
    orig_shape = x.shape
    orig_dtype = x.dtype
    total = int(x.size)
    if total == 0:
        return x

    itemsize = jnp.dtype(orig_dtype).itemsize
    sublane = max(8, 32 // max(itemsize, 1))   # 8 f32, 16 bf16/fp16, 32 int8/fp8

    # --- choose a lane-dense width that divides total exactly (no pad pass) ---
    cols = None
    for c in (512, 256, 128):
        if total % c == 0:
            cols = c
            break

    flat = x.reshape(-1)                       # contiguous reshape: free
    if cols is None:
        # Rare ragged fallback: pad to the next multiple of 128 (waste <= 127
        # elements; zeros are numerically safe since 0 / 0.01 == 0).
        cols = 128
        rows = pl.cdiv(total, cols)
        padded = rows * cols
        flat = jnp.pad(flat, (0, padded - total))
    else:
        rows = total // cols
        padded = total
    x2d = flat.reshape(rows, cols)

    # --- generation-specific block sizing ---
    target_block_bytes, vmem_limit, n_cores = _tuning_for_device()

    tile_rows = max(sublane, target_block_bytes // (cols * itemsize))
    tile_rows -= tile_rows % sublane           # align to native packed tile
    tile_rows = min(tile_rows, rows)           # full-extent block is always legal

    # v7x only: ensure >= ~4 grid steps per TensorCore when the slab is more
    # than a couple of blocks, so the BlockSpec pipeline can hide in/out DMAs
    # on both cores.  Skipped on single-TC v5e/v6e (would be pure overhead).
    if n_cores > 1 and rows > 2 * tile_rows:
        min_steps = 4 * n_cores
        if pl.cdiv(rows, tile_rows) < min_steps:
            tr = pl.cdiv(rows, min_steps)
            tr = ((tr + sublane - 1) // sublane) * sublane
            tile_rows = max(sublane, min(tile_rows, tr))

    grid = (pl.cdiv(rows, tile_rows),)

    cost = pl.CostEstimate(
        flops=3 * total,                        # abs + add + div per element
        transcendentals=0,
        bytes_accessed=2 * total * itemsize,
    )

    out2d = pl.pallas_call(
        _lf_softsign_kernel,
        out_shape=jax.ShapeDtypeStruct((rows, cols), orig_dtype),
        grid=grid,
        in_specs=[pl.BlockSpec((tile_rows, cols), lambda i: (i, 0))],
        out_specs=pl.BlockSpec((tile_rows, cols), lambda i: (i, 0)),
        compiler_params=pltpu.CompilerParams(
            dimension_semantics=("parallel",),
            vmem_limit_bytes=vmem_limit,
        ),
        cost_estimate=cost,
    )(x2d)

    out_flat = out2d.reshape(-1)
    if padded != total:
        out_flat = out_flat[:total]
    return out_flat.reshape(orig_shape)


if __name__ == "__main__":
    key = jax.random.PRNGKey(0)
    # NCHW input consistent with a conv-style module: batch=2, channels=4, 16x16
    x = jax.random.normal(key, (2, 4, 16, 16), dtype=jnp.float32)

    y = jax.block_until_ready(lf_softsign(x))

    # Reference check in plain JAX
    y_ref = x / (0.01 + jnp.abs(x))
    assert y.shape == x.shape and y.dtype == x.dtype
    assert jnp.allclose(y, y_ref, atol=1e-6, rtol=1e-6)

    print("KERNEL_OK")
</pallas_src>

<mosaic_0001>
module attributes {stable_mosaic.version = 11 : i64} {
  func.func @_lf_softsign_kernel(%arg0: i32, %arg1: memref<4x512xf32, #tpu.memory_space<vmem>>, %arg2: memref<4x512xf32, #tpu.memory_space<vmem>>) attributes {dimension_semantics = [#tpu.dimension_semantics<parallel>], iteration_bounds = array<i64: 1>, scalar_prefetch = 0 : i64, scratch_operands = 0 : i64, tpu.core_type = #tpu.core_type<tc>, window_params = [{transform_indices = @transform_0, window_bounds = array<i64: 4, 512>}, {transform_indices = @transform_1, window_bounds = array<i64: 4, 512>}]} {
    %c0 = arith.constant 0 : index
    %c0_0 = arith.constant 0 : index
    %0 = vector.load %arg1[%c0, %c0_0] : memref<4x512xf32, #tpu.memory_space<vmem>>, vector<4x512xf32>
    %1 = math.absf %0 : vector<4x512xf32>
    %cst = arith.constant 0.00999999977 : f32
    %2 = vector.broadcast %cst : f32 to vector<4x512xf32>
    %3 = arith.addf %2, %1 : vector<4x512xf32>
    %4 = arith.divf %0, %3 : vector<4x512xf32>
    %c0_1 = arith.constant 0 : index
    %c0_2 = arith.constant 0 : index
    %5 = vector.load %arg2[%c0_1, %c0_2] : memref<4x512xf32, #tpu.memory_space<vmem>>, vector<4x512xf32>
    tpu.vector_store %arg2[%c0_1, %c0_2], %4 {strides = array<i32>} : memref<4x512xf32, #tpu.memory_space<vmem>>, vector<4x512xf32>,
    return
  }
  func.func @transform_0(%arg0: i32) -> (i32, i32) {
    %c0_i32 = arith.constant 0 : i32
    %c0_i32_0 = arith.constant 0 : i32
    return %arg0, %c0_i32 : i32, i32
  }
  func.func @transform_1(%arg0: i32) -> (i32, i32) {
    %c0_i32 = arith.constant 0 : i32
    %c0_i32_0 = arith.constant 0 : i32
    return %arg0, %c0_i32 : i32, i32
  }
}

</mosaic_0001>

<bundles_post_ra>
// kernel: tpu_custom_call.1
= control target key start
LH: loop header
LB: loop body
LE: loop exit
PB: predicated region body
PF: predicated region fallthrough
CT: control target
= control target key end

     0   :  { %6 = vsyncpa [#allocation3], 0  ;;  %s138_s0 = inlined_call_operand.hbm [shape: f32[4,512], index: 0, kind: input, shape index: {}]   ;;  %s139_s1 = inlined_call_operand.hbm [shape: f32[4,512], index: 1, kind: output, shape index: {}]  }
   0x1   :  { %7 = vsyncpa [#allocation4], 0  ;;  %s102_s6 = smov [#allocation2]   ;;  %s54_s10 = scalar_lea.hbm %s138_s0, 256 }
   0x2   :  { %s14_s7 = sshll.u32 %s102_s6, 4  ;;  %p55_p0 = scmp.ne.s32.totalorder %s138_s0, %s54_s10  ;;  %s15_s7 = int_to_ptr.vmem [resolvable:$true] %s14_s7 }
   0x3   :  { %p58_p1 = scmp.lt.u32.totalorder %s54_s10, %s138_s0 }
   0x5   :  { %p60_p2 = pnand %p58_p1, %p55_p0 }
   0x7   :  { %63 = shalt.err (!%p60_p2)
}
   0x8   :  { %s64_s15 = scalar_lea.vmem %s15_s7, 256  ;;  %p69_p4 = scmp.lt.s32.totalorder %s15_s7, %s15_s7 }
   0x9   :  { %p65_p3 = scmp.ne.s32.totalorder %s15_s7, %s64_s15  ;;  %p70_p5 = scmp.lt.s32.totalorder %s64_s15, %s64_s15 }
   0xb   :  { %p71_p6 = por %p70_p5, %p69_p4 }
   0xd   :  { %p72_p7 = pnand %p71_p6, %p65_p3 }
   0xf   :  { %75 = shalt.err (!%p72_p7)
}
  0x10   :  { %17 = dma.hbm_to_vmem [thread:$0]  %s138_s0, 256, %s15_s7, [#allocation3]  }
  0x11   :  { %98 = dma.done.wait [#allocation3], 256  }
  0x12   :  { %99 = vsyncadd [#allocation3], 4294967040  ;;  %v21_v0 = vld [vmem:[#allocation2] sm:$0xff]  ;;  %v22_v1 = vld [vmem:[#allocation2 + $0x8] sm:$0xff]  ;;  %s103_s18 = smov [#allocation5]  }
  0x13   :  { %v23_v2 = vand.u32 2147483647, %v21_v0  ;;  %v24_v3 = vand.u32 2147483647, %v22_v1  ;;  %s39_s19 = sshll.u32 %s103_s18, 4  ;;  %s40_s19 = int_to_ptr.vmem [resolvable:$true] %s39_s19 }
  0x14   :  { %s76_s0 = scalar_lea.vmem %s40_s19, 256  ;;  %p81_p9 = scmp.lt.s32.totalorder %s40_s19, %s40_s19 }
  0x15   :  { %v25_v4 = vadd.f32 0.01, %v23_v2  ;;  %v26_v5 = vadd.f32 0.01, %v24_v3  ;;  %p77_p8 = scmp.ne.s32.totalorder %s40_s19, %s76_s0  ;;  %p82_p10 = scmp.lt.s32.totalorder %s76_s0, %s76_s0 }
  0x17   :  { %50 = vrcp.f32 %v25_v4  ;;  %p83_p11 = por %p82_p10, %p81_p9 }
  0x18   :  { %52 = vrcp.f32 %v26_v5 }
  0x19   :  { %p84_p12 = pnand %p83_p11, %p77_p8 }
  0x21   :  { %v51_v6 = vpop.eup %50 }
  0x22   :  { %v53_v7 = vpop.eup %52  ;;  %v28_v8 = vmul.f32 %v51_v6, %v21_v0 }
  0x23   :  { %v30_v9 = vmul.f32 %v53_v7, %v22_v1 }
  0x24   :  { %31 = vst [vmem:[#allocation5] sm:$0xff] %v28_v8 }
  0x25   :  { %32 = vst [vmem:[#allocation5 + $0x8] sm:$0xff] %v30_v9 }
  0x26   :  { %87 = shalt.err (!%p84_p12)
}
  0x27   :  { %s88_s22 = scalar_lea.hbm %s139_s1, 256 }
  0x28   :  { %p89_p13 = scmp.ne.s32.totalorder %s139_s1, %s88_s22  ;;  %p92_p0 = scmp.lt.u32.totalorder %s88_s22, %s139_s1 }
  0x2a   :  { %p94_p1 = pnand %p92_p0, %p89_p13 }
  0x2c   :  { %97 = shalt.err (!%p94_p1)
}
  0x2d   :  { %42 = dma.vmem_to_hbm [thread:$0]  %s40_s19, 256, %s139_s1, [#allocation4]  }
  0x2e   :  { %100 = dma.done.wait [#allocation4], 256  }
  0x2f   :  { %101 = vsyncadd [#allocation4], 4294967040 }
  0x30   :  { %46 = vsyncpa [#allocation3], 1 }
  0x31   :  { %47 = vsyncpa [#allocation4], 1 }

</bundles_post_ra>
